<compile_context>
chip_gen: v6e
topology: v6e:2x2x1
jax: 0.10.0
libtpu: 0.0.40
codegen_flags: <defaults>
</compile_context>

<pallas_src>
import jax
import jax.numpy as jnp
from jax.experimental import pallas as pl
from jax.experimental.pallas import tpu as pltpu


def _cdiv(a, b):
    return -(-a // b)


def _sublane_pack(itemsize):
    # Minimum sublane tile: 8 for 4-byte, 16 for 2-byte, 32 for 1-byte dtypes.
    return max(8, 32 // max(1, itemsize))


def _default_target_tile_bytes():
    """Generation-aware x-tile size: bigger tiles where HBM is faster."""
    try:
        info = pltpu.get_tpu_info()
    except Exception:
        return 4 << 20
    name = ""
    for attr in ("chip_version", "version", "name"):
        v = getattr(info, attr, None)
        if v is not None:
            name += str(v).lower() + " "
    try:
        vmem = int(getattr(info, "vmem_capacity_bytes", 0) or 0)
    except Exception:
        vmem = 0
    if "7" in name or (0 < vmem <= (64 << 20)):
        return 8 << 20   # v7x: ~3.2 TB/s HBM; amortize per-step overhead
    if "6" in name:
        return 4 << 20   # v6e: ~1.4 TB/s
    if "5" in name:
        return 2 << 20   # v5e: ~0.8 TB/s; overhead already small, save VMEM
    return 4 << 20


def _pick_lane_tile(lanes, want):
    """Largest 128-multiple <= want that divides `lanes` (avoids a masked
    partial trailing j-block); falls back to the plain 128-multiple."""
    want = min(want, lanes)
    want = max(128, (want // 128) * 128)
    for cand in range(want, 127, -128):
        if lanes % cand == 0:
            return cand
    return want


def _choose_tiles(rows, lanes, itemsize, target_bytes, pack, max_tile_r):
    """Pick (tile_r, tile_hw) for a (rows, lanes) view, ~target_bytes per x-tile.

    Prefers full-lane tiles (contiguous HBM reads/writes, unmasked stores) and
    sizes the row tile; only splits the lane dim when even `pack` full rows
    blow the budget.  Prefers growing lanes over rows so the narrow bias block
    stays cheap in VMEM.
    """
    if pack * lanes * itemsize <= 2 * target_bytes:
        tile_hw = lanes
        want_r = max(pack, target_bytes // max(1, lanes * itemsize))
        tile_r = min(rows, want_r, max_tile_r)
        if tile_r < rows:
            tile_r = max(pack, (tile_r // pack) * pack)
    else:
        tile_r = rows if rows <= pack else pack
        want_hw = max(512, target_bytes // max(1, tile_r * itemsize))
        tile_hw = _pick_lane_tile(lanes, want_hw)
    return tile_r, tile_hw


def _ensure_min_grid_steps(tile_r, tile_hw, rows, lanes, pack, min_steps):
    """Shrink tiles until the grid has >= min_steps steps (v7x has 2 TCs that
    only get work with multiple parallel steps).  Shrink rows first: keeps
    lane-dense, contiguous stores."""
    def nsteps(tr, th):
        return _cdiv(rows, tr) * _cdiv(lanes, th)
    while nsteps(tile_r, tile_hw) < min_steps and tile_r > pack:
        tile_r = max(pack, (tile_r // 2 // pack) * pack)
    while nsteps(tile_r, tile_hw) < min_steps and tile_hw > 128:
        tile_hw = max(128, (tile_hw // 2 // 128) * 128)
    return tile_r, tile_hw


def _bias_add_kernel(x_ref, b_ref, o_ref):
    # b_ref is (tile_r, 1) (lane broadcast) or (1, tile_hw) (sublane broadcast);
    # the VPU handles both with a plain broadcast-add.
    o_ref[...] = x_ref[...] + b_ref[...]


def learnable_bias_forward(x, bias, *, tile_r=None, tile_hw=None,
                           target_tile_bytes=None, donate_x=False):
    """out = x + bias.expand_as(x);  x: (N, C, H, W), bias: (1, C, 1, 1).

    donate_x=True aliases x's HBM buffer to the output.  This only pays off if
    the caller never reuses x AND donates it at the jax.jit boundary (and the
    2D reshape lowers to a bitcast); otherwise XLA inserts a defensive copy.
    """
    N, C, H, W = x.shape
    assert bias.shape == (1, C, 1, 1), bias.shape
    hw = H * W
    itemsize = jnp.dtype(x.dtype).itemsize
    pack = _sublane_pack(itemsize)
    if target_tile_bytes is None:
        target_tile_bytes = _default_target_tile_bytes()

    row_layout = (hw % 128 == 0)
    if row_layout:
        # One (n, c) plane per row; per-row bias column.
        rows, lanes = N * C, hw
        x2 = x.reshape(rows, lanes)
        b2 = jnp.broadcast_to(bias.reshape(1, C), (N, C)).reshape(rows, 1)
        # Cap tile_r: the (tile_r, 1) bias block costs ceil(tile_r/pack)*4KiB
        # of VMEM per buffer for only tile_r useful scalars.
        max_tile_r = 4096
    else:
        # Fold all planes of one sample into a lane-dense row; tiny (1, C*hw)
        # bias row broadcast across sublanes (keeps stores unmasked for
        # hw = 49, 196, ... shapes).
        rows, lanes = N, C * hw
        x2 = x.reshape(rows, lanes)
        b2 = jnp.broadcast_to(bias.reshape(C, 1), (C, hw)).reshape(1, lanes)
        max_tile_r = 1024
    # NOTE: cast differs slightly from PyTorch type-promotion for
    # mixed-precision params; acceptable for a bias add.
    b2 = b2.astype(x.dtype)

    auto_r, auto_hw = _choose_tiles(rows, lanes, itemsize, target_tile_bytes,
                                    pack, max_tile_r)
    tile_r = auto_r if tile_r is None else tile_r
    tile_hw = auto_hw if tile_hw is None else tile_hw
    # (pack, 128) lowering rule for caller-supplied tiles: multiple of the
    # hardware tiling, or the full array dim.
    tile_r = rows if tile_r >= rows else min(max(pack, (tile_r // pack) * pack), rows)
    tile_hw = lanes if tile_hw >= lanes else min(max(128, (tile_hw // 128) * 128), lanes)

    headroom = 4 << 20
    vmem_cap = 48 << 20   # never request all of v7x's 64 MiB physical VMEM

    def vmem_needed(tr, th):
        x_tile = _cdiv(tr, pack) * pack * _cdiv(th, 128) * 128 * itemsize
        bias_tile = (_cdiv(tr, pack) if row_layout else _cdiv(th, 128)) * 4096
        return 4 * x_tile + 2 * bias_tile + headroom  # in + out, double-buffered

    while vmem_needed(tile_r, tile_hw) > vmem_cap and tile_r > pack:
        tile_r = max(pack, (tile_r // 2 // pack) * pack)
    while vmem_needed(tile_r, tile_hw) > vmem_cap and tile_hw > 128:
        tile_hw = max(128, (tile_hw // 2 // 128) * 128)

    # Keep >= 4 parallel grid steps on non-tiny inputs (2-TC v7x sharding +
    # prefetch/compute/writeback overlap); tiny tensors stay single-step.
    if rows * lanes * itemsize >= (2 << 20):
        tile_r, tile_hw = _ensure_min_grid_steps(tile_r, tile_hw, rows, lanes,
                                                 pack, min_steps=4)

    r_blocks = _cdiv(rows, tile_r)
    l_blocks = _cdiv(lanes, tile_hw)

    if row_layout:
        # Row-tile axis outer -> bias column fetched once per row tile, never
        # re-DMA'd across the inner lane axis.
        grid = (r_blocks, l_blocks)
        x_spec = pl.BlockSpec((tile_r, tile_hw), lambda i, j: (i, j))
        b_spec = pl.BlockSpec((tile_r, 1), lambda i, j: (i, 0))
        o_spec = pl.BlockSpec((tile_r, tile_hw), lambda i, j: (i, j))
    else:
        # Lane-tile axis outer -> bias row fetched once per lane tile.
        grid = (l_blocks, r_blocks)
        x_spec = pl.BlockSpec((tile_r, tile_hw), lambda j, i: (i, j))
        b_spec = pl.BlockSpec((1, tile_hw), lambda j, i: (0, j))
        o_spec = pl.BlockSpec((tile_r, tile_hw), lambda j, i: (i, j))

    vmem_limit = int(min(max(vmem_needed(tile_r, tile_hw), 16 << 20), vmem_cap))
    cost = pl.CostEstimate(
        flops=rows * lanes,
        transcendentals=0,
        bytes_accessed=(2 * rows * lanes + b2.size) * itemsize,
    )

    out2 = pl.pallas_call(
        _bias_add_kernel,
        out_shape=jax.ShapeDtypeStruct((rows, lanes), x.dtype),
        grid_spec=pltpu.PrefetchScalarGridSpec(
            num_scalar_prefetch=0,
            grid=grid,
            in_specs=[x_spec, b_spec],
            out_specs=o_spec,
        ),
        compiler_params=pltpu.CompilerParams(
            dimension_semantics=("parallel", "parallel"),
            vmem_limit_bytes=vmem_limit,
        ),
        cost_estimate=cost,
        input_output_aliases={0: 0} if donate_x else {},
    )(x2, b2)

    return out2.reshape(N, C, H, W)


if __name__ == "__main__":
    key = jax.random.PRNGKey(0)

    def ref(x, b):
        return x + jnp.broadcast_to(b, x.shape)

    k1, k2, k3, k4, k5, k6 = jax.random.split(key, 6)

    # 1) Small NCHW shape consistent with the module (bias is (1, C, 1, 1)).
    N, C, H, W = 2, 4, 16, 16
    x = jax.random.normal(k1, (N, C, H, W), dtype=jnp.float32)
    b = 0.01 * jax.random.normal(k2, (1, C, 1, 1), dtype=jnp.float32)
    out = jax.block_until_ready(learnable_bias_forward(x, b))
    assert out.shape == x.shape and out.dtype == x.dtype
    assert jnp.allclose(out, ref(x, b), atol=1e-6, rtol=1e-6)

    # 2) Non-128-multiple spatial (7x7): exercises the lane-dense (N, C*H*W)
    #    layout with a sublane-broadcast bias row.
    x2 = jax.random.normal(k3, (2, 8, 7, 7), dtype=jnp.float32)
    b2 = 0.01 * jax.random.normal(k4, (1, 8, 1, 1), dtype=jnp.float32)
    out2 = jax.block_until_ready(learnable_bias_forward(x2, b2))
    assert jnp.allclose(out2, ref(x2, b2), atol=1e-6, rtol=1e-6)

    # 3) Forced multi-step grid on the row layout (small tile target):
    #    exercises pipelined row tiling and per-row-tile bias indexing.
    x3 = jax.random.normal(k5, (2, 16, 32, 32), dtype=jnp.float32)
    b3 = 0.01 * jax.random.normal(k6, (1, 16, 1, 1), dtype=jnp.float32)
    out3 = jax.block_until_ready(
        learnable_bias_forward(x3, b3, target_tile_bytes=16 * 1024))
    assert jnp.allclose(out3, ref(x3, b3), atol=1e-6, rtol=1e-6)

    # 4) Forced lane splitting on the lane layout (14x14 spatial): exercises a
    #    masked partial trailing lane block + per-lane-tile bias indexing.
    x4 = jax.random.normal(k1, (4, 16, 14, 14), dtype=jnp.float32)
    b4 = 0.01 * jax.random.normal(k2, (1, 16, 1, 1), dtype=jnp.float32)
    out4 = jax.block_until_ready(
        learnable_bias_forward(x4, b4, target_tile_bytes=32 * 1024))
    assert jnp.allclose(out4, ref(x4, b4), atol=1e-6, rtol=1e-6)

    print("KERNEL_OK")
</pallas_src>

<mosaic_0001>
module attributes {stable_mosaic.version = 11 : i64} {
  func.func @_bias_add_kernel(%arg0: i32, %arg1: i32, %arg2: memref<8x256xf32, #tpu.memory_space<vmem>>, %arg3: memref<8x1xf32, #tpu.memory_space<vmem>>, %arg4: memref<8x256xf32, #tpu.memory_space<vmem>>) attributes {dimension_semantics = [#tpu.dimension_semantics<parallel>, #tpu.dimension_semantics<parallel>], iteration_bounds = array<i64: 1, 1>, scalar_prefetch = 0 : i64, scratch_operands = 0 : i64, tpu.core_type = #tpu.core_type<tc>, window_params = [{transform_indices = @transform_0, window_bounds = array<i64: 8, 256>}, {transform_indices = @transform_1, window_bounds = array<i64: 8, 1>}, {transform_indices = @transform_2, window_bounds = array<i64: 8, 256>}]} {
    %c0 = arith.constant 0 : index
    %c0_0 = arith.constant 0 : index
    %0 = vector.load %arg2[%c0, %c0_0] : memref<8x256xf32, #tpu.memory_space<vmem>>, vector<8x256xf32>
    %c0_1 = arith.constant 0 : index
    %c0_2 = arith.constant 0 : index
    %1 = vector.load %arg3[%c0_1, %c0_2] : memref<8x1xf32, #tpu.memory_space<vmem>>, vector<8x1xf32>
    %2 = vector.broadcast %1 : vector<8x1xf32> to vector<8x256xf32>
    %3 = arith.addf %0, %2 : vector<8x256xf32>
    %c0_3 = arith.constant 0 : index
    %c0_4 = arith.constant 0 : index
    %4 = vector.load %arg4[%c0_3, %c0_4] : memref<8x256xf32, #tpu.memory_space<vmem>>, vector<8x256xf32>
    tpu.vector_store %arg4[%c0_3, %c0_4], %3 {strides = array<i32>} : memref<8x256xf32, #tpu.memory_space<vmem>>, vector<8x256xf32>,
    return
  }
  func.func @transform_0(%arg0: i32, %arg1: i32) -> (i32, i32) {
    %c0_i32 = arith.constant 0 : i32
    return %arg0, %arg1 : i32, i32
  }
  func.func @transform_1(%arg0: i32, %arg1: i32) -> (i32, i32) {
    %c0_i32 = arith.constant 0 : i32
    %c0_i32_0 = arith.constant 0 : i32
    return %arg0, %c0_i32 : i32, i32
  }
  func.func @transform_2(%arg0: i32, %arg1: i32) -> (i32, i32) {
    %c0_i32 = arith.constant 0 : i32
    return %arg0, %arg1 : i32, i32
  }
}

</mosaic_0001>

<bundles_post_ra>
// kernel: tpu_custom_call.1
= control target key start
LH: loop header
LB: loop body
LE: loop exit
PB: predicated region body
PF: predicated region fallthrough
CT: control target
= control target key end

     0   :  { %7 = vsyncpa [#allocation3], 0  ;;  %s126_s0 = inlined_call_operand.hbm [shape: f32[8,256], index: 0, kind: input, shape index: {}]   ;;  %s127_s1 = inlined_call_operand.vmem [shape: f32[8,1], index: 1, kind: input, shape index: {}]   ;;  %s128_s2 = inlined_call_operand.hbm [shape: f32[8,256], index: 2, kind: output, shape index: {}]  }
   0x1   :  { %8 = vsyncpa [#allocation4], 0  ;;  %s99_s9 = smov [#allocation2]  }
   0x2   :  { %s15_s10 = sshll.u32 %s99_s9, 4  ;;  %s16_s10 = int_to_ptr.vmem [resolvable:$true] %s15_s10 }
   0x3   :  { %s63_s11 = scalar_lea.vmem %s16_s10, 256  ;;  %p68_p1 = scmp.lt.s32.totalorder %s16_s10, %s16_s10 }
   0x4   :  { %p64_p0 = scmp.ne.s32.totalorder %s16_s10, %s63_s11  ;;  %p69_p2 = scmp.lt.s32.totalorder %s63_s11, %s63_s11 }
   0x6   :  { %p70_p3 = por %p69_p2, %p68_p1 }
   0x8   :  { %p71_p4 = pnand %p70_p3, %p64_p0 }
   0xa   :  { %74 = shalt.err (!%p71_p4)
}
   0xb   :  { %18 = dma.hbm_to_vmem [thread:$0]  %s126_s0, 256, %s16_s10, [#allocation3]  }
   0xc   :  { %95 = dma.done.wait [#allocation3], 256  }
   0xd   :  { %96 = vsyncadd [#allocation3], 4294967040  ;;  %v100_v0 = vmov 0   ;;  %v26_v1 = vld [vmem:[%s127_s1] sm:$0xff]  ;;  %v25_v3 = vld [vmem:[#allocation2 + $0x8] sm:$0xff]  ;;  %s101_s16 = smov [#allocation5]  }
   0xe   :  { %54 = vset.pattern.permute.xlu0 %v100_v0  ;;  %v24_v2 = vld [vmem:[#allocation2] sm:$0xff]  ;;  %s42_s17 = sshll.u32 %s101_s16, 4  ;;  %s43_s17 = int_to_ptr.vmem [resolvable:$true] %s42_s17 }
   0xf   :  { %29 = vperm.xlu0 %54, %v26_v1   ;;  %s75_s0 = scalar_lea.vmem %s43_s17, 256  ;;  %p80_p6 = scmp.lt.s32.totalorder %s43_s17, %s43_s17 }
  0x10   :  { %p76_p5 = scmp.ne.s32.totalorder %s43_s17, %s75_s0  ;;  %p81_p7 = scmp.lt.s32.totalorder %s75_s0, %s75_s0 }
  0x12   :  { %p82_p8 = por %p81_p7, %p80_p6 }
  0x14   :  { %p83_p9 = pnand %p82_p8, %p76_p5 }
  0x8a   :  { %v30_v4 = vpop.permute.xlu0 %29 }
  0x8b   :  { %v32_v5 = vadd.f32 %v30_v4, %v24_v2  ;;  %v33_v6 = vadd.f32 %v30_v4, %v25_v3 }
  0x8d   :  { %34 = vst [vmem:[#allocation5] sm:$0xff] %v32_v5  ;;  %35 = vst [vmem:[#allocation5 + $0x8] sm:$0xff] %v33_v6 }
  0x8e   :  { %86 = shalt.err (!%p83_p9)
}
  0x8f   :  { %45 = dma.vmem_to_hbm [thread:$0]  %s43_s17, 256, %s128_s2, [#allocation4]  }
  0x90   :  { %97 = dma.done.wait [#allocation4], 256  }
  0x91   :  { %98 = vsyncadd [#allocation4], 4294967040 }
  0x92   :  { %49 = vsyncpa [#allocation3], 1 }
  0x93   :  { %50 = vsyncpa [#allocation4], 1 }

</bundles_post_ra>
